<compile_context>
chip_gen: v7x
topology: tpu7x:2x2x1
jax: 0.10.0
libtpu: 0.0.40
codegen_flags: <defaults>
</compile_context>

<pallas_src>
import jax
import jax.numpy as jnp
from jax.experimental import pallas as pl
from jax.experimental.pallas import tpu as pltpu


def _embeddings_kernel(patch_ref, w_ref, addend_ref, out_ref):
    """One grid step = `Bb` batch elements.

    patch_ref:  (Bb*N, K)  bf16 im2col patches (N = n_patches per image)
    w_ref:      (K, Hd)    bf16 conv weight as an input-major matmul weight
    addend_ref: (S, Hd)    f32 fused addend: row0 = cls+pos[0], rows1: = bias+pos[1:]
    out_ref:    (Bb, S, Hd) output embeddings (S = N + 1)
    """
    Bb, S, Hd = out_ref.shape
    N = S - 1

    # One tall fused "conv as matmul" on the MXU, f32 accumulation.
    emb = jnp.dot(patch_ref[...], w_ref[...],
                  preferred_element_type=jnp.float32)       # (Bb*N, Hd) f32
    emb = emb.reshape(Bb, N, Hd)                             # free relabel (N % 8 == 0)

    # cls row (row 0): just the fused addend, broadcast over the batch block.
    out_ref[:, 0:1, :] = jnp.broadcast_to(
        addend_ref[0:1, :], (Bb, 1, Hd)).astype(out_ref.dtype)
    # patch rows: matmul result + fused (bias + pos) addend.
    out_ref[:, 1:, :] = (emb + addend_ref[1:, :][None, :, :]).astype(out_ref.dtype)


def prepare_embedding_params(conv_w, conv_b, cls_tok, pos_emb,
                             *, compute_dtype=jnp.bfloat16):
    """One-time parameter prep (layout + fusion), NOT per-forward work.

    conv_w: (Hd, C, P, P)  torch Conv2d weight layout
    conv_b: (Hd,)
    cls_tok: (1, 1, Hd)
    pos_emb: (1, S, Hd)    S = n_patches + 1
    """
    Hd = conv_w.shape[0]
    K = conv_w.shape[1] * conv_w.shape[2] * conv_w.shape[3]
    S = pos_emb.shape[1]

    # Input-major matmul weight, feature order (c, ph, pw); streamed as bf16.
    w = conv_w.reshape(Hd, K).T.astype(compute_dtype)                 # (K, Hd)

    # Fused addend: pos + concat([cls, broadcast(bias)]), kept in f32.
    addend = (jnp.concatenate(
        [cls_tok.reshape(1, Hd),
         jnp.broadcast_to(conv_b.reshape(1, Hd), (S - 1, Hd))], axis=0)
        + pos_emb.reshape(S, Hd)).astype(jnp.float32)                  # (S, Hd)

    return {"w": w, "addend": addend}


def embeddings_forward(x, prepared, *, patch_size, batch_block=8,
                       compute_dtype=jnp.bfloat16):
    """x: (B, C, H, W) float32. Returns (B, n_patches + 1, hidden) float32."""
    B, C, H_img, W_img = x.shape
    P = patch_size
    nH, nW = H_img // P, W_img // P
    N = nH * nW

    w = prepared["w"]                     # (K, Hd) bf16
    addend = prepared["addend"]           # (S, Hd) f32
    K, Hd = w.shape
    S = N + 1

    # ---- host-side layout plumbing (no compute, no extra concat pass) ------
    # im2col: (B, C, H, W) -> (B*N, K); feature order (c, ph, pw) matches w.
    patches = (x.reshape(B, C, nH, P, nW, P)
                 .transpose(0, 2, 4, 1, 3, 5)
                 .reshape(B * N, K)
                 .astype(compute_dtype))

    # Batch block: biggest requested divisor of B (toy sizes are tiny anyway).
    Bb = max(1, min(batch_block, B))
    while B % Bb:
        Bb -= 1

    out = pl.pallas_call(
        _embeddings_kernel,
        grid=(B // Bb,),
        in_specs=[
            pl.BlockSpec((Bb * N, K), lambda bi: (bi, 0)),   # patches (per batch block)
            pl.BlockSpec((K, Hd), lambda bi: (0, 0)),        # weight (VMEM-resident)
            pl.BlockSpec((S, Hd), lambda bi: (0, 0)),        # fused cls/bias/pos addend
        ],
        out_specs=pl.BlockSpec((Bb, S, Hd), lambda bi: (bi, 0, 0)),
        out_shape=jax.ShapeDtypeStruct((B, S, Hd), x.dtype),
        compiler_params=pltpu.CompilerParams(
            dimension_semantics=("parallel",)),
        # TODO(synk): for real ViT sizes set vmem_limit_bytes explicitly and use
        # pipeline_mode=pl.Buffered(1) on the grid-invariant w/addend specs (v7x
        # 64 MiB VMEM budgeting); unnecessary at this toy size.
    )(patches, w, addend)

    # TODO(synk): Dropout(config.transformer['dropout_rate']) is identity in
    # eval/inference mode, so it is intentionally omitted.
    return out


def _reference(x, params, *, patch_size):
    """Pure-JAX f32 reference mirroring the PyTorch forward (eval mode)."""
    P = patch_size
    y = jax.lax.conv_general_dilated(
        x, params["conv_w"], window_strides=(P, P), padding="VALID",
        dimension_numbers=("NCHW", "OIHW", "NCHW"))
    y = y + params["conv_b"][None, :, None, None]
    B, Hd = y.shape[0], y.shape[1]
    y = y.reshape(B, Hd, -1).transpose(0, 2, 1)                  # (B, n_patches, Hd)
    cls = jnp.broadcast_to(params["cls"], (B, 1, Hd))
    emb = jnp.concatenate([cls, y], axis=1) + params["pos"]
    return emb


if __name__ == "__main__":
    # Small config consistent with the module:
    # img_size=16, patch_size=4, in_channels=3, hidden_size=32 -> n_patches=16
    B, C, IMG, P, HID = 4, 3, 16, 4, 32
    n_patches = (IMG // P) ** 2

    key = jax.random.PRNGKey(0)
    k_x, k_w, k_b, k_cls, k_pos = jax.random.split(key, 5)

    params = {
        "conv_w": jax.random.normal(k_w, (HID, C, P, P), dtype=jnp.float32) * 0.05,
        "conv_b": jax.random.normal(k_b, (HID,), dtype=jnp.float32) * 0.01,
        # torch initializes cls/pos to zeros; random here to exercise the paths.
        "cls": jax.random.normal(k_cls, (1, 1, HID), dtype=jnp.float32) * 0.02,
        "pos": jax.random.normal(k_pos, (1, n_patches + 1, HID),
                                 dtype=jnp.float32) * 0.02,
    }
    x = jax.random.normal(k_x, (B, C, IMG, IMG), dtype=jnp.float32)

    # One-time prep (weight transpose/cast + fused cls/bias/pos addend).
    prepared = prepare_embedding_params(
        params["conv_w"], params["conv_b"], params["cls"], params["pos"])

    out = embeddings_forward(x, prepared, patch_size=P, batch_block=2)
    out = jax.block_until_ready(out)

    ref = _reference(x, params, patch_size=P)
    assert out.shape == (B, n_patches + 1, HID)
    # bf16 streamed operands with f32 accumulation -> loosened tolerance.
    assert jnp.allclose(out, ref, atol=2e-2, rtol=2e-2), \
        float(jnp.max(jnp.abs(out - ref)))

    print("KERNEL_OK")
</pallas_src>

<mosaic_0001>
module attributes {stable_mosaic.version = 11 : i64} {
  func.func @_embeddings_kernel(%arg0: i32, %arg1: memref<32x48xbf16, #tpu.memory_space<vmem>>, %arg2: memref<48x32xbf16, #tpu.memory_space<vmem>>, %arg3: memref<17x32xf32, #tpu.memory_space<vmem>>, %arg4: memref<2x17x32xf32, #tpu.memory_space<vmem>>) attributes {dimension_semantics = [#tpu.dimension_semantics<parallel>], iteration_bounds = array<i64: 2>, scalar_prefetch = 0 : i64, scratch_operands = 0 : i64, tpu.core_type = #tpu.core_type<tc>, window_params = [{transform_indices = @transform_0, window_bounds = array<i64: 32, 48>}, {pipeline_mode = #tpu.pipeline_mode<synchronous>, transform_indices = @transform_1, window_bounds = array<i64: 48, 32>}, {pipeline_mode = #tpu.pipeline_mode<synchronous>, transform_indices = @transform_2, window_bounds = array<i64: 17, 32>}, {transform_indices = @transform_3, window_bounds = array<i64: 2, 17, 32>}]} {
    %c0 = arith.constant 0 : index
    %c0_0 = arith.constant 0 : index
    %0 = vector.load %arg1[%c0, %c0_0] : memref<32x48xbf16, #tpu.memory_space<vmem>>, vector<32x48xbf16>
    %c0_1 = arith.constant 0 : index
    %c0_2 = arith.constant 0 : index
    %1 = vector.load %arg2[%c0_1, %c0_2] : memref<48x32xbf16, #tpu.memory_space<vmem>>, vector<48x32xbf16>
    %cst = arith.constant dense<0.000000e+00> : vector<32x32xf32>
    %2 = tpu.matmul %0, %1, %cst {dimension_numbers = #tpu.dot_dimension_numbers<[1], [0], [0], [1], [0, 0, 1, 1], [], []>} : vector<32x48xbf16>, vector<48x32xbf16>, vector<32x32xf32> -> vector<32x32xf32>
    %3 = vector.shape_cast %2 : vector<32x32xf32> to vector<2x16x32xf32>
    %c0_3 = arith.constant 0 : index
    %c0_4 = arith.constant 0 : index
    %4 = vector.load %arg3[%c0_3, %c0_4] : memref<17x32xf32, #tpu.memory_space<vmem>>, vector<1x32xf32>
    %5 = vector.shape_cast %4 : vector<1x32xf32> to vector<1x1x32xf32>
    %6 = vector.broadcast %5 : vector<1x1x32xf32> to vector<2x1x32xf32>
    %c0_5 = arith.constant 0 : index
    %c0_6 = arith.constant 0 : index
    %c0_7 = arith.constant 0 : index
    %7 = vector.load %arg4[%c0_5, %c0_6, %c0_7] : memref<2x17x32xf32, #tpu.memory_space<vmem>>, vector<2x1x32xf32>
    tpu.vector_store %arg4[%c0_5, %c0_6, %c0_7], %6 {strides = array<i32>} : memref<2x17x32xf32, #tpu.memory_space<vmem>>, vector<2x1x32xf32>,
    %c1 = arith.constant 1 : index
    %c0_8 = arith.constant 0 : index
    %8 = vector.load %arg3[%c1, %c0_8] : memref<17x32xf32, #tpu.memory_space<vmem>>, vector<16x32xf32>
    %9 = vector.shape_cast %8 : vector<16x32xf32> to vector<1x16x32xf32>
    %10 = vector.broadcast %9 : vector<1x16x32xf32> to vector<2x16x32xf32>
    %11 = arith.addf %3, %10 : vector<2x16x32xf32>
    %c0_9 = arith.constant 0 : index
    %c1_10 = arith.constant 1 : index
    %c0_11 = arith.constant 0 : index
    %12 = vector.load %arg4[%c0_9, %c1_10, %c0_11] : memref<2x17x32xf32, #tpu.memory_space<vmem>>, vector<2x16x32xf32>
    tpu.vector_store %arg4[%c0_9, %c1_10, %c0_11], %11 {strides = array<i32>} : memref<2x17x32xf32, #tpu.memory_space<vmem>>, vector<2x16x32xf32>,
    return
  }
  func.func @transform_0(%arg0: i32) -> (i32, i32) {
    %c0_i32 = arith.constant 0 : i32
    %c0_i32_0 = arith.constant 0 : i32
    return %arg0, %c0_i32 : i32, i32
  }
  func.func @transform_1(%arg0: i32) -> (i32, i32) {
    %c0_i32 = arith.constant 0 : i32
    %c0_i32_0 = arith.constant 0 : i32
    %c0_i32_1 = arith.constant 0 : i32
    return %c0_i32, %c0_i32_0 : i32, i32
  }
  func.func @transform_2(%arg0: i32) -> (i32, i32) {
    %c0_i32 = arith.constant 0 : i32
    %c0_i32_0 = arith.constant 0 : i32
    %c0_i32_1 = arith.constant 0 : i32
    return %c0_i32, %c0_i32_0 : i32, i32
  }
  func.func @transform_3(%arg0: i32) -> (i32, i32, i32) {
    %c0_i32 = arith.constant 0 : i32
    %c0_i32_0 = arith.constant 0 : i32
    %c0_i32_1 = arith.constant 0 : i32
    return %arg0, %c0_i32, %c0_i32_0 : i32, i32, i32
  }
}

</mosaic_0001>

<bundles_post_ra>
// kernel: tpu_custom_call.1
= control target key start
LH: loop header
LB: loop body
LE: loop exit
PB: predicated region body
PF: predicated region fallthrough
CT: control target
= control target key end

     0   :  { %s419_s12 = smov 0   ;;  %s454_s0 = inlined_call_operand.vmem [shape: bf16[64,48], index: 0, kind: input, shape index: {}]   ;;  %s455_s1 = inlined_call_operand.vmem [shape: bf16[48,32], index: 1, kind: input, shape index: {}]   ;;  %s456_s2 = inlined_call_operand.vmem [shape: f32[17,32], index: 2, kind: input, shape index: {}]   ;;  %s457_s3 = inlined_call_operand.vmem [shape: f32[4,17,32], index: 3, kind: output, shape index: {}]  }
   0x1 LB: > { %s344_s13 = sadd.s32 4294967295, %s397_s12   ;;  %p348_p0 = scmp.ge.s32.totalorder %s397_s12, 1  ;;  %s397_s12 = sphi %s419_s12, %s13_s12  }
   0x2   : > { %p138_p1 = scmp.lt.s32.totalorder %s397_s12, 3 }
   0x4   : > { %p139_p2 = pnand %p348_p0, %p138_p1 }
   0x5   : > { %v386_v0 = vld [vmem:[%s455_s1] sm:$0xff] (!%p139_p2)   ;;  %s349_s16 = sshll.u32 (!%p139_p2), %s344_s13, 2  ;;  %v387_v1 = vld [vmem:[%s455_s1 + $0x8] sm:$0xff] (!%p139_p2)   ;;  %v388_v2 = vld [vmem:[%s455_s1 + $0x10] sm:$0xff] (!%p139_p2)   ;;  %vm215_vm0 = vcmask (!%p139_p2), 392192   ;;  %s351_s25 = sshll.u32 (!%p139_p2), %s344_s13, 1 }
   0x6   : > { %142 = sbr.rel (%p139_p2) target bundleno = 236 (0xec), region = 32  ;;  %p164_p3 = scmp.lt.s32.totalorder (!%p139_p2), %s349_s16, 7  ;;  %367 = vmatprep.subr.bf16.mxu0 (!%p139_p2), %v386_v0  ;;  %v271_v5 = vld [vmem:[%s456_s2] sm:$0x1] (!%p139_p2)  ;;  %vm272_vm1 = vcmask (!%p139_p2), 253952   ;;  %v275_v6 = vld [vmem:[%s456_s2 + $0x1] sm:$0xff] (!%p139_p2) }
   0x7   : > { %368 = vmatpush3.bf16.msra.mxu0 (!%p139_p2), %v386_v0  ;;  %p170_p4 = scmp.lt.s32.totalorder (!%p139_p2), %s351_s25, 3  ;;  %vm281_vm2 = vcmask (!%p139_p2), 261120   ;;  %v276_v9 = vld [vmem:[%s456_s2 + $0x9] sm:$0xff] (!%p139_p2) }
   0x8   : > { %369 = vmatprep.subr.bf16.mxu0 (!%p139_p2), %v387_v1 }
   0xb   : > { %370 = vmatpush3.bf16.msra.mxu0 (!%p139_p2), %v387_v1 }
   0xc   : > { %371 = vmatprep.subr.bf16.mxu0 (!%p139_p2), %v388_v2 }
   0xd   : > { %s459_s16 = smov (!%p164_p3, %s349_s16), 7  ;;  %s461_s25 = smov (!%p170_p4, %s351_s25), 3 }
   0xe   : > { %s350_s21 = sshll.u32 %s459_s16, 2  ;;  %s377_s26 = smul.u32 24, %s461_s25 }
   0xf   : > { %s167_s24 = scalar_lea.vmem %s454_s0, %s350_s21  ;;  %372 = vmatpush3.bf16.msra.mxu0 %v388_v2 }
  0x10   : > { %v389_v3 = vld [vmem:[%s167_s24] sm:$0xff]   ;;  %v390_v4 = vld [vmem:[%s167_s24 + $0x8] sm:$0xff]   ;;  %s174_s4 = scalar_lea.vmem %s457_s3, %s377_s26 }
  0x11   : > { %373 = vmatprep.mubr.msk.bf16.mxu0 %vm215_vm0, %v389_v3  ;;  %273 = vst.msk [vmem:[%s174_s4] sm:$0x1] %vm272_vm1, %v271_v5  ;;  %274 = vst.msk [vmem:[%s174_s4 + $0x18] sm:$0x1] %vm272_vm1, %v271_v5 }
  0x12   : > { %374 = vmatmul.mubr.msk.bf16.vlgmr.msra.gmra.mrb[0].mxu0 %vm215_vm0, %v390_v4 }
  0xe5   : > { %v375_v7 = vpop.f32.mrb[0].mxu0 }
  0xe6   : > { %v256_v8 = vpop.f32.mrb[1].mxu0  ;;  %v279_v12 = vadd.f32 %v375_v7, %v275_v6 }
  0xe7   : > { %v277_v10 = vadd.f32 %v275_v6, %v256_v8  ;;  %v376_v11 = vpop.f32.mrb[2].mxu0 }
  0xe8   : > { %v259_v13 = vpop.f32.mrb[3].mxu0  ;;  %284 = vst.msk [vmem:[%s174_s4 + $0x19] sm:$0xff] %vm281_vm2, %v279_v12  ;;  %v280_v15 = vadd.f32 %v376_v11, %v276_v9 }
  0xe9   : > { %282 = vst.msk [vmem:[%s174_s4 + $0x1] sm:$0xff] %vm281_vm2, %v277_v10  ;;  %v278_v14 = vadd.f32 %v276_v9, %v259_v13 }
  0xea   : > { %285 = vst.msk [vmem:[%s174_s4 + $0x21] sm:$0xff] %vm281_vm2, %v280_v15 }
  0xeb   : > { %283 = vst.msk [vmem:[%s174_s4 + $0x9] sm:$0xff] %vm281_vm2, %v278_v14 }
  0xec PF: > { %s13_s12 = sadd.s32 1, %s397_s12  }
  0xed   : > { %p10_p5 = scmp.ge.s32.totalorder %s13_s12, 4  }
  0xef   :  { %12 = sbr.rel (!%p10_p5) target bundleno = 1 (0x1), region = 62 }

</bundles_post_ra>
